<compile_context>
chip_gen: v7x
topology: tpu7x:2x2x1
jax: 0.10.0
libtpu: 0.0.40
codegen_flags: <defaults>
</compile_context>

<pallas_src>
import functools
import math

import jax
import jax.numpy as jnp
from jax import lax
from jax.experimental import pallas as pl
from jax.experimental.pallas import tpu as pltpu


def _round_up(x, m):
    return ((x + m - 1) // m) * m


# ---------------------------------------------------------------------------
# Kernels
# ---------------------------------------------------------------------------
def _sdpa_single_kernel(*refs, scale, mxu_dtype, has_mask, k_pad, k_valid):
    """Single pass over the whole key axis (no online-softmax bookkeeping)."""
    if has_mask:
        q_ref, k_ref, v_ref, mask_ref, o_ref = refs
    else:
        q_ref, k_ref, v_ref, o_ref = refs
        mask_ref = None

    # q / temperature once; operands go to the MXU in bf16 (or native) dtype.
    q = (q_ref[...] * jnp.asarray(scale, q_ref.dtype)).astype(mxu_dtype)
    k = k_ref[...].astype(mxu_dtype)
    s = lax.dot_general(q, k, (((2,), (2,)), ((0,), (0,))),
                        preferred_element_type=jnp.float32)        # (Bblk, tq, Lk)

    if has_mask:
        s = jnp.where(mask_ref[...] == 0, jnp.float32(-1e9), s)
    elif k_pad:
        # Unmasked variant with padded keys: kill the padding columns in-kernel
        # (no mask tensor in HBM).  The predicate is a (1,1,Lk) row vector.
        col = lax.broadcasted_iota(jnp.int32, (1, 1, s.shape[2]), 2)
        s = jnp.where(col < k_valid, s, jnp.float32(-1e9))

    m = jnp.max(s, axis=-1, keepdims=True)
    p = jnp.exp(s - m)
    l = jnp.sum(p, axis=-1, keepdims=True)
    pv = lax.dot_general(p.astype(mxu_dtype), v_ref[...].astype(mxu_dtype),
                         (((2,), (1,)), ((0,), (0,))),
                         preferred_element_type=jnp.float32)       # (Bblk, tq, Dv)
    o_ref[...] = (pv / l).astype(o_ref.dtype)                      # exact reciprocal


def _sdpa_flash_kernel(*refs, scale, mxu_dtype, has_mask, k_pad, k_valid, tk):
    """Flash-style online-softmax kernel (kv axis is the innermost grid axis)."""
    if has_mask:
        q_ref, k_ref, v_ref, mask_ref, o_ref, qs_sc, m_sc, l_sc, acc_sc = refs
    else:
        q_ref, k_ref, v_ref, o_ref, qs_sc, m_sc, l_sc, acc_sc = refs
        mask_ref = None

    ki = pl.program_id(2)

    @pl.when(ki == 0)
    def _init():
        # Hoist q * (1/temperature) and the MXU-dtype cast out of the kv loop.
        qs_sc[...] = (q_ref[...] * jnp.asarray(scale, q_ref.dtype)).astype(qs_sc.dtype)
        m_sc[...] = jnp.full_like(m_sc, -jnp.inf)
        l_sc[...] = jnp.zeros_like(l_sc)
        acc_sc[...] = jnp.zeros_like(acc_sc)

    s = lax.dot_general(qs_sc[...], k_ref[...].astype(mxu_dtype),
                        (((2,), (2,)), ((0,), (0,))),
                        preferred_element_type=jnp.float32)        # (Bblk, tq, tk)

    if has_mask:
        s = jnp.where(mask_ref[...] == 0, jnp.float32(-1e9), s)
    elif k_pad:
        # Only the last kv tile actually contains padded columns; the predicate
        # is a cheap (1,1,tk) row vector and the single select pass is hidden
        # under the EUP exp work of the same tile.
        col = ki * tk + lax.broadcasted_iota(jnp.int32, (1, 1, s.shape[2]), 2)
        s = jnp.where(col < k_valid, s, jnp.float32(-1e9))

    m_prev = m_sc[...]
    m_new = jnp.maximum(m_prev, jnp.max(s, axis=-1, keepdims=True))
    alpha = jnp.exp(m_prev - m_new)
    p = jnp.exp(s - m_new)
    l_sc[...] = alpha * l_sc[...] + jnp.sum(p, axis=-1, keepdims=True)
    pv = lax.dot_general(p.astype(mxu_dtype), v_ref[...].astype(mxu_dtype),
                         (((2,), (1,)), ((0,), (0,))),
                         preferred_element_type=jnp.float32)
    acc_sc[...] = alpha * acc_sc[...] + pv
    m_sc[...] = m_new

    @pl.when(ki == pl.num_programs(2) - 1)
    def _finalize():
        o_ref[...] = (acc_sc[...] / l_sc[...]).astype(o_ref.dtype)


# ---------------------------------------------------------------------------
# Wrapper
# ---------------------------------------------------------------------------
def scaled_dot_product_attention(v, k, q, temperature, mask=None, *,
                                 block_q=None, block_k=None,
                                 downcast_f32_to_bf16=True):
    """Pallas implementation of ScaledDotProductAttention.forward(v, k, q, mask)."""
    assert q.ndim >= 2 and k.ndim == q.ndim and v.ndim == q.ndim
    *lead, Lq, D = q.shape
    lead = tuple(lead)
    Lk, Dv = k.shape[-2], v.shape[-1]
    assert k.shape[-1] == D and v.shape[-2] == Lk

    BH = int(math.prod(lead)) if lead else 1
    q3 = q.reshape(BH, Lq, D)
    k3 = k.reshape(BH, Lk, D)
    v3 = v.reshape(BH, Lk, Dv)

    out_dtype = q.dtype
    mxu_dtype = (jnp.bfloat16
                 if (downcast_f32_to_bf16 and q.dtype == jnp.float32)
                 else q.dtype)

    has_mask = mask is not None

    # ---- mask sharing mode (avoid materializing a per-head mask) -----------
    H = lead[-1] if lead else 1
    mask_mode = "head"
    mshape = None
    if has_mask:
        assert mask.ndim <= q.ndim, "mask must broadcast to q's shape"
        mshape = (1,) * (q.ndim - mask.ndim) + tuple(mask.shape)
        lead_m = mshape[:len(lead)]
        if all(d == 1 for d in lead_m):
            mask_mode = "shared"                 # one mask for all batch*head
        elif len(lead) >= 2 and lead_m[-1] == 1:
            mask_mode = "batch"                  # shared across heads only

    # ---- per-generation VMEM budget + explicit limit ------------------------
    try:
        vmem_cap = int(pltpu.get_tpu_info().vmem_capacity_bytes)
    except Exception:
        vmem_cap = 64 * 1024 * 1024              # conservative (v7x-sized) fallback
    budget = (3 * vmem_cap) // 8                 # ~24 MiB (v7x) / ~48 MiB (v5e, v6e)
    vmem_limit = min(vmem_cap // 2, budget + (16 << 20))

    q_isz = q3.dtype.itemsize
    k_isz = k3.dtype.itemsize
    v_isz = v3.dtype.itemsize
    o_isz = jnp.dtype(out_dtype).itemsize
    mxu_isz = jnp.dtype(mxu_dtype).itemsize

    def _est_vmem(bb, tq_, tk_, single):
        io = (bb * tq_ * D * q_isz + bb * tk_ * D * k_isz
              + bb * tk_ * Dv * v_isz + bb * tq_ * Dv * o_isz)
        if has_mask:
            io += (bb if mask_mode == "head" else 1) * tq_ * tk_   # int8 mask tile
        total = 2 * io                                             # double buffering
        if not single:
            total += bb * tq_ * D * mxu_isz + bb * tq_ * (Dv + 2) * 4
        total += 3 * bb * tq_ * tk_ * 4                            # s/p temporaries
        return total

    # ---- q tiling ------------------------------------------------------------
    if block_q is not None:
        tq = max(8, _round_up(int(block_q), 8))
    elif Lq <= 512:
        tq = _round_up(Lq, 8)                    # single q tile
    else:
        tq = min((512, 384, 256, 128), key=lambda t: (_round_up(Lq, t), -t))
    lq_pad = _round_up(Lq, tq)

    # ---- kv tiling: single pass over Lk whenever it fits VMEM ---------------
    lk8 = _round_up(Lk, 8)
    if block_k is not None:
        tk = max(8, _round_up(int(block_k), 8))
        lk_pad = _round_up(Lk, tk)
        if has_mask and lk_pad != tk and tk % 128:
            tk = _round_up(tk, 128)              # mask tile last dim constraint
            lk_pad = _round_up(Lk, tk)
    elif _est_vmem(1, tq, lk8, True) <= budget:
        tk, lk_pad = lk8, lk8                    # one kv pass, no online softmax
    else:
        tk = 128
        for cand in (512, 256, 128):
            if _est_vmem(1, tq, cand, False) <= budget:
                tk = cand
                break
        lk_pad = _round_up(Lk, tk)
        while _est_vmem(1, tq, tk, False) > budget and tq > 128:
            tq = max(128, (tq // 2) // 128 * 128)
            lq_pad = _round_up(Lq, tq)
    single_kv = (lk_pad == tk)

    # ---- pad inputs ----------------------------------------------------------
    if lq_pad != Lq:
        q3 = jnp.pad(q3, ((0, 0), (0, lq_pad - Lq), (0, 0)))
    if lk_pad != Lk:
        k3 = jnp.pad(k3, ((0, 0), (0, lk_pad - Lk), (0, 0)))
        v3 = jnp.pad(v3, ((0, 0), (0, lk_pad - Lk), (0, 0)))

    m3 = None
    if has_mask:
        if mask_mode == "head":
            m3 = jnp.broadcast_to(mask, lead + (Lq, Lk)).reshape(BH, Lq, Lk)
        else:
            mal = jnp.reshape(mask, mshape)
            if mask_mode == "shared":
                mal = jnp.reshape(mal, mshape[len(lead):])
                m3 = jnp.broadcast_to(mal, (Lq, Lk)).reshape(1, Lq, Lk)
            else:  # "batch": shared over heads, one slice per batch
                mal = jnp.squeeze(mal, axis=len(lead) - 1)
                bl = lead[:-1]
                Bm = int(math.prod(bl)) if bl else 1
                m3 = jnp.broadcast_to(mal, bl + (Lq, Lk)).reshape(Bm, Lq, Lk)
        m3 = (m3 != 0).astype(jnp.int8)          # 1-byte mask
        if lq_pad != Lq or lk_pad != Lk:
            # pad value 0 == masked -> padded keys get -1e9 and underflow to 0
            m3 = jnp.pad(m3, ((0, 0), (0, lq_pad - Lq), (0, lk_pad - Lk)))

    # ---- batch several (batch*head) slices per grid step --------------------
    n_qtiles = lq_pad // tq
    max_par = BH * n_qtiles
    bblk = 1
    for d in range(1, BH + 1):
        if BH % d:
            continue
        if has_mask and mask_mode == "batch" and H % d:
            continue                             # block must stay within one batch
        if (BH // d) * n_qtiles < min(2, max_par):
            continue                             # keep >=2 parallel steps (2-TC chips)
        if _est_vmem(d, tq, tk, single_kv) > budget:
            continue
        bblk = d

    scale = 1.0 / float(temperature)
    k_pad_fix = (not has_mask) and (lk_pad != Lk)

    if single_kv:
        grid = (BH // bblk, n_qtiles)
        in_specs = [
            pl.BlockSpec((bblk, tq, D), lambda b, qi: (b, qi, 0)),       # q
            pl.BlockSpec((bblk, lk_pad, D), lambda b, qi: (b, 0, 0)),    # k
            pl.BlockSpec((bblk, lk_pad, Dv), lambda b, qi: (b, 0, 0)),   # v
        ]
        inputs = [q3, k3, v3]
        if has_mask:
            if mask_mode == "head":
                in_specs.append(pl.BlockSpec((bblk, tq, lk_pad),
                                             lambda b, qi: (b, qi, 0)))
            elif mask_mode == "batch":
                in_specs.append(pl.BlockSpec(
                    (1, tq, lk_pad),
                    lambda b, qi, _bb=bblk, _h=H: ((b * _bb) // _h, qi, 0)))
            else:
                in_specs.append(pl.BlockSpec((1, tq, lk_pad),
                                             lambda b, qi: (0, qi, 0)))
            inputs.append(m3)
        out_spec = pl.BlockSpec((bblk, tq, Dv), lambda b, qi: (b, qi, 0))
        scratch = []
        kernel = functools.partial(
            _sdpa_single_kernel, scale=scale, mxu_dtype=mxu_dtype,
            has_mask=has_mask, k_pad=k_pad_fix, k_valid=Lk)
        dims = ("parallel", "parallel")
    else:
        grid = (BH // bblk, n_qtiles, lk_pad // tk)
        in_specs = [
            pl.BlockSpec((bblk, tq, D), lambda b, qi, ki: (b, qi, 0)),   # q
            pl.BlockSpec((bblk, tk, D), lambda b, qi, ki: (b, ki, 0)),   # k
            pl.BlockSpec((bblk, tk, Dv), lambda b, qi, ki: (b, ki, 0)),  # v
        ]
        inputs = [q3, k3, v3]
        if has_mask:
            if mask_mode == "head":
                in_specs.append(pl.BlockSpec((bblk, tq, tk),
                                             lambda b, qi, ki: (b, qi, ki)))
            elif mask_mode == "batch":
                in_specs.append(pl.BlockSpec(
                    (1, tq, tk),
                    lambda b, qi, ki, _bb=bblk, _h=H: ((b * _bb) // _h, qi, ki)))
            else:
                in_specs.append(pl.BlockSpec((1, tq, tk),
                                             lambda b, qi, ki: (0, qi, ki)))
            inputs.append(m3)
        out_spec = pl.BlockSpec((bblk, tq, Dv), lambda b, qi, ki: (b, qi, 0))
        scratch = [
            pltpu.VMEM((bblk, tq, D), mxu_dtype),     # scaled q (cast once per tile)
            pltpu.VMEM((bblk, tq, 1), jnp.float32),   # running max
            pltpu.VMEM((bblk, tq, 1), jnp.float32),   # running sum
            pltpu.VMEM((bblk, tq, Dv), jnp.float32),  # output accumulator
        ]
        kernel = functools.partial(
            _sdpa_flash_kernel, scale=scale, mxu_dtype=mxu_dtype,
            has_mask=has_mask, k_pad=k_pad_fix, k_valid=Lk, tk=tk)
        dims = ("parallel", "parallel", "arbitrary")

    out = pl.pallas_call(
        kernel,
        out_shape=jax.ShapeDtypeStruct((BH, lq_pad, Dv), out_dtype),
        grid_spec=pltpu.PrefetchScalarGridSpec(
            num_scalar_prefetch=0,
            grid=grid,
            in_specs=in_specs,
            out_specs=out_spec,
            scratch_shapes=scratch,
        ),
        compiler_params=pltpu.CompilerParams(
            dimension_semantics=dims,
            vmem_limit_bytes=int(vmem_limit),
        ),
    )(*inputs)

    if lq_pad != Lq:
        out = out[:, :Lq, :]
    return out.reshape(lead + (Lq, Dv))


# ---------------------------------------------------------------------------
# Reference + self-test
# ---------------------------------------------------------------------------
def _reference(v, k, q, temperature, mask=None):
    attn = jnp.matmul(q / temperature, jnp.swapaxes(k, -2, -1))
    if mask is not None:
        attn = jnp.where(mask == 0, -1e9, attn)
    attn = jax.nn.softmax(attn, axis=-1)
    return jnp.matmul(attn, v)


if __name__ == "__main__":
    key = jax.random.PRNGKey(0)
    kq, kk, kv_, km = jax.random.split(key, 4)

    # [B, H, L, D] as used by the module
    B, H, L, D = 2, 2, 8, 32
    temperature = float(D) ** 0.5

    q = jax.random.normal(kq, (B, H, L, D), dtype=jnp.float32)
    k = jax.random.normal(kk, (B, H, L, D), dtype=jnp.float32)
    v = jax.random.normal(kv_, (B, H, L, D), dtype=jnp.float32)
    mask_h = (jax.random.uniform(km, (B, H, L, L)) > 0.2).astype(jnp.int32)
    mask_b = (jax.random.uniform(km, (B, 1, L, L)) > 0.2).astype(jnp.int32)
    mask_s = (jax.random.uniform(km, (L, L)) > 0.2).astype(jnp.int32)

    def check(name, out, ref, atol, rtol):
        ok = jnp.allclose(out.astype(jnp.float32), ref, atol=atol, rtol=rtol)
        assert bool(ok), f"{name} mismatch"

    # f32, no mask (single kv pass; no mask operand at all)
    out = jax.block_until_ready(scaled_dot_product_attention(v, k, q, temperature))
    check("no-mask", out, _reference(v, k, q, temperature), 2e-2, 2e-2)

    # f32, per-head mask
    out = jax.block_until_ready(
        scaled_dot_product_attention(v, k, q, temperature, mask=mask_h))
    check("per-head mask", out, _reference(v, k, q, temperature, mask=mask_h), 2e-2, 2e-2)

    # mask broadcast over heads -> stays [B, Lq, Lk] in HBM
    out = jax.block_until_ready(
        scaled_dot_product_attention(v, k, q, temperature, mask=mask_b))
    check("per-batch mask", out, _reference(v, k, q, temperature, mask=mask_b), 2e-2, 2e-2)

    # mask broadcast over batch and heads -> single shared [1, Lq, Lk] mask
    out = jax.block_until_ready(
        scaled_dot_product_attention(v, k, q, temperature, mask=mask_s))
    check("shared mask", out, _reference(v, k, q, temperature, mask=mask_s), 2e-2, 2e-2)

    # bf16 fast path (native bf16 MXU operands, f32 accumulation)
    qb, kb, vb = (x.astype(jnp.bfloat16) for x in (q, k, v))
    out = jax.block_until_ready(
        scaled_dot_product_attention(vb, kb, qb, temperature, mask=mask_h))
    check("bf16", out, _reference(v, k, q, temperature, mask=mask_h), 1e-1, 1e-1)

    # longer, non-multiple-of-8 sequence: padding + single-kv-pass path
    B2, H2, L2, D2 = 1, 2, 203, 32
    t2 = float(D2) ** 0.5
    k2a, k2b, k2c, k2d = jax.random.split(jax.random.PRNGKey(1), 4)
    q2 = jax.random.normal(k2a, (B2, H2, L2, D2), dtype=jnp.float32)
    k2 = jax.random.normal(k2b, (B2, H2, L2, D2), dtype=jnp.float32)
    v2 = jax.random.normal(k2c, (B2, H2, L2, D2), dtype=jnp.float32)
    m2 = (jax.random.uniform(k2d, (B2, H2, L2, L2)) > 0.2).astype(jnp.int32)

    out = jax.block_until_ready(scaled_dot_product_attention(v2, k2, q2, t2))
    check("padded no-mask", out, _reference(v2, k2, q2, t2), 2e-2, 2e-2)
    out = jax.block_until_ready(scaled_dot_product_attention(v2, k2, q2, t2, mask=m2))
    check("padded mask", out, _reference(v2, k2, q2, t2, mask=m2), 2e-2, 2e-2)

    # force the flash (multi kv-tile online-softmax) path
    out = jax.block_until_ready(
        scaled_dot_product_attention(v2, k2, q2, t2, block_q=128, block_k=128))
    check("flash no-mask", out, _reference(v2, k2, q2, t2), 2e-2, 2e-2)
    out = jax.block_until_ready(
        scaled_dot_product_attention(v2, k2, q2, t2, mask=m2, block_q=128, block_k=128))
    check("flash mask", out, _reference(v2, k2, q2, t2, mask=m2), 2e-2, 2e-2)

    print("KERNEL_OK")
</pallas_src>

<mosaic_0001>
module attributes {stable_mosaic.version = 11 : i64} {
  func.func @_sdpa_single_kernel(%arg0: i32, %arg1: i32, %arg2: memref<2x8x32xf32, #tpu.memory_space<vmem>>, %arg3: memref<2x8x32xf32, #tpu.memory_space<vmem>>, %arg4: memref<2x8x32xf32, #tpu.memory_space<vmem>>, %arg5: memref<2x8x32xf32, #tpu.memory_space<vmem>>) attributes {dimension_semantics = [#tpu.dimension_semantics<parallel>, #tpu.dimension_semantics<parallel>], iteration_bounds = array<i64: 2, 1>, scalar_prefetch = 0 : i64, scratch_operands = 0 : i64, tpu.core_type = #tpu.core_type<tc>, window_params = [{transform_indices = @transform_0, window_bounds = array<i64: 2, 8, 32>}, {transform_indices = @transform_1, window_bounds = array<i64: 2, 8, 32>}, {transform_indices = @transform_2, window_bounds = array<i64: 2, 8, 32>}, {transform_indices = @transform_3, window_bounds = array<i64: 2, 8, 32>}]} {
    %c0 = arith.constant 0 : index
    %c0_0 = arith.constant 0 : index
    %c0_1 = arith.constant 0 : index
    %0 = vector.load %arg2[%c0, %c0_0, %c0_1] : memref<2x8x32xf32, #tpu.memory_space<vmem>>, vector<2x8x32xf32>
    %cst = arith.constant 0.176776692 : f32
    %1 = vector.broadcast %cst : f32 to vector<2x8x32xf32>
    %2 = arith.mulf %0, %1 : vector<2x8x32xf32>
    %3 = arith.truncf %2 : vector<2x8x32xf32> to vector<2x8x32xbf16>
    %c0_2 = arith.constant 0 : index
    %c0_3 = arith.constant 0 : index
    %c0_4 = arith.constant 0 : index
    %4 = vector.load %arg3[%c0_2, %c0_3, %c0_4] : memref<2x8x32xf32, #tpu.memory_space<vmem>>, vector<2x8x32xf32>
    %5 = arith.truncf %4 : vector<2x8x32xf32> to vector<2x8x32xbf16>
    %cst_5 = arith.constant dense<0.000000e+00> : vector<2x8x8xf32>
    %6 = tpu.matmul %3, %5, %cst_5 {dimension_numbers = #tpu.dot_dimension_numbers<[2], [2], [1], [1], [0, 0, 0, 1, 1, 1], [0], [0]>} : vector<2x8x32xbf16>, vector<2x8x32xbf16>, vector<2x8x8xf32> -> vector<2x8x8xf32>
    %cst_6 = arith.constant dense<0xFF800000> : vector<2x8xf32>
    %7 = vector.multi_reduction <maximumf>, %6, %cst_6 [2] : vector<2x8x8xf32> to vector<2x8xf32>
    %8 = vector.shape_cast %7 : vector<2x8xf32> to vector<2x8x1xf32>
    %9 = vector.broadcast %8 : vector<2x8x1xf32> to vector<2x8x8xf32>
    %10 = arith.subf %6, %9 : vector<2x8x8xf32>
    %11 = math.exp %10 : vector<2x8x8xf32>
    %cst_7 = arith.constant dense<0.000000e+00> : vector<2x8xf32>
    %12 = vector.multi_reduction <add>, %11, %cst_7 [2] : vector<2x8x8xf32> to vector<2x8xf32>
    %13 = vector.shape_cast %12 : vector<2x8xf32> to vector<2x8x1xf32>
    %14 = arith.truncf %11 : vector<2x8x8xf32> to vector<2x8x8xbf16>
    %c0_8 = arith.constant 0 : index
    %c0_9 = arith.constant 0 : index
    %c0_10 = arith.constant 0 : index
    %15 = vector.load %arg4[%c0_8, %c0_9, %c0_10] : memref<2x8x32xf32, #tpu.memory_space<vmem>>, vector<2x8x32xf32>
    %16 = arith.truncf %15 : vector<2x8x32xf32> to vector<2x8x32xbf16>
    %cst_11 = arith.constant dense<0.000000e+00> : vector<2x8x32xf32>
    %17 = tpu.matmul %14, %16, %cst_11 {dimension_numbers = #tpu.dot_dimension_numbers<[2], [1], [1], [2], [0, 0, 0, 1, 1, 2], [0], [0]>} : vector<2x8x8xbf16>, vector<2x8x32xbf16>, vector<2x8x32xf32> -> vector<2x8x32xf32>
    %18 = vector.broadcast %13 : vector<2x8x1xf32> to vector<2x8x32xf32>
    %19 = arith.divf %17, %18 : vector<2x8x32xf32>
    %c0_12 = arith.constant 0 : index
    %c0_13 = arith.constant 0 : index
    %c0_14 = arith.constant 0 : index
    %20 = vector.load %arg5[%c0_12, %c0_13, %c0_14] : memref<2x8x32xf32, #tpu.memory_space<vmem>>, vector<2x8x32xf32>
    tpu.vector_store %arg5[%c0_12, %c0_13, %c0_14], %19 {strides = array<i32>} : memref<2x8x32xf32, #tpu.memory_space<vmem>>, vector<2x8x32xf32>,
    return
  }
  func.func @transform_0(%arg0: i32, %arg1: i32) -> (i32, i32, i32) {
    %c0_i32 = arith.constant 0 : i32
    %c0_i32_0 = arith.constant 0 : i32
    return %arg0, %arg1, %c0_i32 : i32, i32, i32
  }
  func.func @transform_1(%arg0: i32, %arg1: i32) -> (i32, i32, i32) {
    %c0_i32 = arith.constant 0 : i32
    %c0_i32_0 = arith.constant 0 : i32
    %c0_i32_1 = arith.constant 0 : i32
    return %arg0, %c0_i32, %c0_i32_0 : i32, i32, i32
  }
  func.func @transform_2(%arg0: i32, %arg1: i32) -> (i32, i32, i32) {
    %c0_i32 = arith.constant 0 : i32
    %c0_i32_0 = arith.constant 0 : i32
    %c0_i32_1 = arith.constant 0 : i32
    return %arg0, %c0_i32, %c0_i32_0 : i32, i32, i32
  }
  func.func @transform_3(%arg0: i32, %arg1: i32) -> (i32, i32, i32) {
    %c0_i32 = arith.constant 0 : i32
    %c0_i32_0 = arith.constant 0 : i32
    return %arg0, %arg1, %c0_i32 : i32, i32, i32
  }
}

</mosaic_0001>

<bundles_post_ra>
// kernel: tpu_custom_call.1
= control target key start
LH: loop header
LB: loop body
LE: loop exit
PB: predicated region body
PF: predicated region fallthrough
CT: control target
= control target key end

     0   :  { %s1315_s0 = inlined_call_operand.hbm [shape: f32[4,8,32], index: 0, kind: input, shape index: {}]   ;;  %s1316_s1 = inlined_call_operand.hbm [shape: f32[4,8,32], index: 1, kind: input, shape index: {}]   ;;  %s1317_s2 = inlined_call_operand.hbm [shape: f32[4,8,32], index: 2, kind: input, shape index: {}]   ;;  %s1318_s3 = inlined_call_operand.hbm [shape: f32[4,8,32], index: 3, kind: output, shape index: {}]  }
   0x1   :  { %1328 = sst [smem:[#allocation15_spill]] %s1316_s1 }
   0x2   :  { %8 = vsyncpa [#allocation3], 0 }
   0x3   :  { %10 = vsyncpa [#allocation3 + $0x1], 0 }
   0x4   :  { %11 = vsyncpa [#allocation6], 0 }
   0x5   :  { %13 = vsyncpa [#allocation6 + $0x1], 0 }
   0x6   :  { %14 = vsyncpa [#allocation4], 0 }
   0x7   :  { %16 = vsyncpa [#allocation4 + $0x1], 0  ;;  %s1015_s12 = smov 0   ;;  %s1017_s13 = smov 0  }
   0x8   :  { %s1019_s14 = smov 0   ;;  %s1021_s15 = smov 0  }
   0x9   :  { %s1023_s16 = smov 0   ;;  %s1025_s17 = smov 0  }
   0xa LB: > { %1329 = sst [smem:[#allocation12_spill]] %s979_s16  ;;  %s1046_s18 = sadd.s32 4294967295, %s983_s17   ;;  %s983_s17 = sphi %s1025_s17, %s22_s17   ;;  %s979_s16 = sphi %s1023_s16, %s1352_s16   ;;  %s975_s15 = sphi %s1021_s15, %s1351_s15   ;;  %s971_s14 = sphi %s1019_s14, %s1355_s14   ;;  %s967_s13 = sphi %s1017_s13, %s1354_s13   ;;  %s963_s12 = sphi %s1015_s12, %s1353_s12  }
   0xb   : > { %s659_s19 = sadd.s32 4294967294, %s983_s17   ;;  %s34_s20 = sadd.s32 1, %s979_s16 }
   0xc   : > { %s43_s21 = sadd.s32 1, %s971_s14  ;;  %p36_p0 = scmp.ge.s32.totalorder %s34_s20, 2 }
   0xd   : > { %p50_p1 = scmp.ne.s32.totalorder %s971_s14, %s967_s13  ;;  %p51_p2 = scmp.eq.s32.totalorder %s983_s17, 0 }
   0xe   : > { %p56_p3 = scmp.ne.s32.totalorder %s967_s13, %s963_s12  ;;  %s1357_s20 = smov (%p36_p0, %s34_s20), 0 }
   0xf   : > { %1330 = sst [smem:[#allocation13_spill]] %s1357_s20  ;;  %p1058_p4 = por %p51_p2, %p50_p1 }
  0x10   : > { %p57_p5 = scmp.eq.s32.totalorder %s1046_s18, 0  ;;  %s38_s23 = ssub.s32 %s979_s16, %s1357_s20 }
  0x11   : > { %p134_p6 = scmp.eq.s32.totalorder %s1046_s18, 1  ;;  %p41_p7 = scmp.eq.s32.totalorder %s38_s23, 0 }
  0x12   : > { %p1066_p8 = por %p57_p5, %p56_p3  ;;  %p140_p10 = scmp.eq.s32.totalorder %s659_s19, 1 }
  0x13   : > { %p1070_p9 = por %p134_p6, %p50_p1  ;;  %p743_p13 = scmp.lt.s32.totalorder %s983_s17, 2 }
  0x14   : > { %s1332_s24 = scalar_select %p1066_p8, 1, 0 }
  0x15   : > { %s1333_s25 = scalar_select %p1070_p9, 1, 0 }
  0x16   : > { %s1075_s26 = scalar_select %p41_p7, %s971_s14, %s43_s21  }
  0x17   : > { %p1077_p11 = por %p140_p10, %p56_p3  ;;  %s1321_s28 = sand.u32 1, %s971_s14  }
  0x18   : > { %1334 = sst [smem:[#allocation14_spill]] %s1075_s26  ;;  %s1086_s29 = sshll.u32 %s1321_s28, 4 }
  0x19   : > { %s1335_s27 = scalar_select %p1077_p11, 1, 0 }
  0x1a   : > { %s1089_s30 = sshll.u32 %s979_s16, 8  ;;  %p1093_p0 = pnand %p743_p13, %p1058_p4 }
  0x1b   : > { %s182_s5 = sand.u32 1, %s983_s17   ;;  %s1337_s1 = sld [smem:[#allocation15_spill]] }
  0x1c   : > { %s186_s9 = scalar_lea.vmem [#allocation5], %s1086_s29  ;;  %s1109_s11 = scalar_lea.sflag [#allocation6], %s182_s5 }
  0x1d   : > { %s193_s10 = sshll.u32 %s186_s9, 4  ;;  %p1115_p4 = pneg %p1093_p0  ;;  %s1106_s10 = int_to_ptr.vmem [resolvable:$true] %s193_s10 }
  0x21   : > { %s1102_s8 = scalar_lea.hbm %s1337_s1, %s1089_s30  ;;  %s812_s6 = scalar_lea.hbm %s1337_s1, 512 }
  0x22   : > { %s807_s19 = scalar_lea.hbm %s1102_s8, 256  ;;  %p813_p7 = scmp.lt.u32.totalorder %s1102_s8, %s1337_s1 }
  0x23   : > { %p808_p3 = scmp.ne.s32.totalorder %s1102_s8, %s807_s19  ;;  %p814_p10 = scmp.lt.u32.totalorder %s812_s6, %s807_s19 }
  0x24   : > { %p816_p12 = scmp.lt.u32.totalorder %s807_s19, %s1102_s8 }
  0x25   : > { %p810_p5 = pnand %p1115_p4, %p808_p3  ;;  %p815_p13 = por %p814_p10, %p813_p7 }
  0x27   : > { %p811_p6 = pneg %p810_p5  ;;  %p817_p1 = por %p816_p12, %p815_p13 }
  0x29   : > { %p818_p2 = pnand %p817_p1, %p811_p6 }
  0x2b   : > { %821 = shalt.err (!%p818_p2)
}
  0x2c   : > { %s822_s5 = scalar_lea.vmem %s1106_s10, 256  ;;  %s985_s22 = smov [#allocation5]  }
  0x2d   : > { %p823_p3 = scmp.ne.s32.totalorder %s1106_s10, %s822_s5  ;;  %s827_s23 = sshll.u32 %s985_s22, 4  ;;  %s828_s23 = int_to_ptr.vmem [resolvable:$false] %s827_s23 }
  0x2e   : > { %s829_s7 = scalar_lea.vmem %s828_s23, 512  ;;  %p830_p9 = scmp.lt.s32.totalorder %s1106_s10, %s828_s23 }
  0x2f   : > { %p825_p5 = pnand %p823_p3, %p1115_p4  ;;  %p831_p8 = scmp.lt.s32.totalorder %s829_s7, %s822_s5 }
  0x31   : > { %p826_p11 = pneg %p825_p5  ;;  %p832_p7 = por %p831_p8, %p830_p9 }
  0x33   : > { %p833_p10 = pnand %p832_p7, %p826_p11 }
  0x35   : > { %836 = shalt.err (!%p833_p10)
}
  0x36   : > { %s1322_s19 = smov 128   ;;  %s1324_s6 = smov 8  }
  0x37   : > { %735 = dma.hbm_to_vmem [thread:$0]  (!%p1093_p0), %s1102_s8, 256, %s1106_s10, %s1109_s11, %s1322_s19, %s1322_s19, %s1324_s6  }
  0x38   : > { %p1339_p8 = scmp.lt.s32.totalorder %s983_s17, 3  ;;  %p1340_p9 = scmp.ge.s32.totalorder %s983_s17, 1 }
  0x39   : > { %s1154_s23 = scalar_lea.hbm %s1315_s0, %s1089_s30  ;;  %s164_s7 = scalar_lea.vmem [#allocation2], %s1086_s29 }
  0x3a   : > { %p1146_p11 = pnand %p1340_p9, %p1339_p8  ;;  %s172_s28 = sshll.u32 %s164_s7, 4  ;;  %s1157_s28 = int_to_ptr.vmem [resolvable:$true] %s172_s28 }
  0x3b   : > { %s1163_s19 = scalar_lea.hbm %s1317_s2, %s1089_s30  ;;  %s1342_s6 = sand.u32 1, %s971_s14  }
  0x3c   : > { %s1341_s9 = scalar_select %p1146_p11, 1, 0 }
  0x3d   : > { %s1167_s1 = scalar_lea.sflag [#allocation3], %s1342_s6  ;;  %s837_s20 = scalar_lea.hbm %s1154_s23, 256 }
  0x3e   : > { %p838_p12 = scmp.ne.s32.totalorder %s1154_s23, %s837_s20  ;;  %s842_s16 = scalar_lea.hbm %s1315_s0, 512 }
  0x3f   : > { %p843_p6 = scmp.lt.u32.totalorder %s1154_s23, %s1315_s0  ;;  %p844_p13 = scmp.lt.u32.totalorder %s842_s16, %s837_s20 }
  0x40   : > { %p840_p1 = pnand %p838_p12, %p1115_p4  ;;  %p846_p5 = scmp.lt.u32.totalorder %s837_s20, %s1154_s23 }
  0x41   : > { %p845_p3 = por %p844_p13, %p843_p6 }
  0x42   : > { %p841_p2 = pneg %p840_p1 }
  0x43   : > { %p847_p7 = por %p846_p5, %p845_p3 }
  0x45   : > { %p848_p10 = pnand %p847_p7, %p841_p2 }
  0x47   : > { %851 = shalt.err (!%p848_p10)
}
  0x48   : > { %s852_s30 = scalar_lea.vmem %s1157_s28, 256  ;;  %s988_s6 = smov [#allocation2]  }
  0x49   : > { %p853_p8 = scmp.ne.s32.totalorder %s1157_s28, %s852_s30  ;;  %s857_s8 = sshll.u32 %s988_s6, 4  ;;  %s858_s8 = int_to_ptr.vmem [resolvable:$false] %s857_s8 }
  0x4a   : > { %s859_s26 = scalar_lea.vmem %s858_s8, 512  ;;  %p860_p1 = scmp.lt.s32.totalorder %s1157_s28, %s858_s8 }
  0x4b   : > { %p855_p9 = pnand %p853_p8, %p1115_p4  ;;  %p861_p11 = scmp.lt.s32.totalorder %s859_s26, %s852_s30 }
  0x4d   : > { %p856_p12 = pneg %p855_p9  ;;  %p862_p6 = por %p861_p11, %p860_p1 }
  0x4f   : > { %p863_p13 = pnand %p862_p6, %p856_p12 }
  0x51   : > { %866 = shalt.err (!%p863_p13)
}
  0x52   : > { %s1343_s16 = smov 8   ;;  %s1344_s20 = smov 128  }
  0x53   : > { %732 = dma.hbm_to_vmem [thread:$0]  (!%p1093_p0), %s1154_s23, 256, %s1157_s28, %s1167_s1, %s1344_s20, %s1344_s20, %s1343_s16  }
  0x54   : > { %s207_s10 = scalar_lea.vmem [#allocation7], %s1086_s29  ;;  %s867_s22 = scalar_lea.hbm %s1163_s19, 256 }
  0x55   : > { %s214_s5 = sshll.u32 %s207_s10, 4  ;;  %p868_p11 = scmp.ne.s32.totalorder %s1163_s19, %s867_s22  ;;  %s1195_s5 = int_to_ptr.vmem [resolvable:$true] %s214_s5 }
  0x56   : > { %s872_s6 = scalar_lea.hbm %s1317_s2, 512  ;;  %p873_p5 = scmp.lt.u32.totalorder %s1163_s19, %s1317_s2 }
  0x57   : > { %p870_p2 = pnand %p868_p11, %p1115_p4  ;;  %p874_p7 = scmp.lt.u32.totalorder %s872_s6, %s867_s22 }
  0x58   : > { %p876_p8 = scmp.lt.u32.totalorder %s867_s22, %s1163_s19 }
  0x59   : > { %p871_p3 = pneg %p870_p2  ;;  %p875_p10 = por %p874_p7, %p873_p5 }
  0x5b   : > { %p877_p9 = por %p876_p8, %p875_p10 }
  0x5d   : > { %p878_p12 = pnand %p877_p9, %p871_p3 }
  0x5f   : > { %881 = shalt.err (!%p878_p12)
}
  0x60   : > { %s882_s1 = scalar_lea.vmem %s1195_s5, 256  ;;  %s989_s28 = smov [#allocation7]  }
  0x61   : > { %p883_p1 = scmp.ne.s32.totalorder %s1195_s5, %s882_s1  ;;  %s887_s29 = sshll.u32 %s989_s28, 4  ;;  %s888_s29 = int_to_ptr.vmem [resolvable:$false] %s887_s29 }
  0x62   : > { %s889_s23 = scalar_lea.vmem %s888_s29, 512  ;;  %p890_p11 = scmp.lt.s32.totalorder %s1195_s5, %s888_s29 }
  0x63   : > { %p885_p6 = pnand %p883_p1, %p1115_p4  ;;  %p891_p2 = scmp.lt.s32.totalorder %s889_s23, %s882_s1 }
  0x65   : > { %p886_p13 = pneg %p885_p6  ;;  %p892_p5 = por %p891_p2, %p890_p11 }
  0x67   : > { %p893_p7 = pnand %p892_p5, %p886_p13 }
  0x69   : > { %896 = shalt.err (!%p893_p7)
}
  0x6a   : > { %738 = dma.hbm_to_vmem [thread:$0]  (!%p1093_p0), %s1163_s19, 256, %s1195_s5, %s1109_s11, %s1344_s20, %s1344_s20, %s1343_s16  }
  0x6b   : > { %p1345_p4 = scmp.ne.s32.totalorder %s1341_s9, 0 }
  0x6c   : > { %s1225_s21 = sand.u32 (!%p1345_p4), 1, %s967_s13   ;;  %p1346_p3 = scmp.ne.s32.totalorder (!%p1345_p4), %s1332_s24, 0 }
  0x6d   : > { %226 = sbr.rel (%p1345_p4) target bundleno = 736 (0x2e0), region = 32  ;;  %s1228_s10 = sshll.u32 (!%p1345_p4), %s1225_s21, 4 }
  0x6e   : > { %s229_s4 = scalar_lea.sflag (!%p1345_p4), [#allocation3], %s1225_s21  ;;  %s232_s22 = scalar_lea.vmem (!%p1345_p4), [#allocation2], %s1228_s10 }
  0x74   : > { %950 = dma.done.wait (%p1346_p3), %s229_s4, 256  }
  0x75   : > { %952 = vsyncadd (%p1346_p3), %s229_s4, 4294967040  ;;  %s237_s11 = sand.u32 1, %s1046_s18   ;;  %s241_s9 = scalar_lea.vmem [#allocation5], %s1228_s10 }
  0x76   : > { %s238_s19 = scalar_lea.sflag [#allocation6], %s237_s11 }
  0x77   : > { %954 = dma.done.wait (%p1346_p3), %s238_s19, 512  }
  0x78   : > { %956 = vsyncadd (%p1346_p3), %s238_s19, 4294966784  ;;  %v990_v0 = vmov 0.0   ;;  %vm991_vm0 = vmmov 0   ;;  %v294_v1 = vld [vmem:[%s241_s9] sm:$0xff]  ;;  %vm298_vm1 = vcmask 261120   ;;  %v295_v2 = vld [vmem:[%s241_s9 + $0x8] sm:$0xff] }
  0x79   : > { %697 = vmatprep.subr.bf16.mxu0 %v990_v0  ;;  %703 = vmatprep.subr.bf16.mxu1 %v990_v0  ;;  %v288_v3 = vld [vmem:[%s232_s22] sm:$0xff]  ;;  %v296_v4 = vpack.c.bf16 %v294_v1, %v294_v1  ;;  %v297_v5 = vpack.c.bf16 %v295_v2, %v295_v2  ;;  %v289_v6 = vld [vmem:[%s232_s22 + $0x8] sm:$0xff]  ;;  %vm391_vm2 = vcmask 64512   ;;  %s250_s18 = scalar_lea.vmem [#allocation7], %s1228_s10  ;;  %vm419_vm3 = vcmask 1043456   ;;  %s282_s24 = scalar_lea.vmem [#allocation8], %s1228_s10 }
  0x7a   : > { %699 = vmatprep.mubr.msk.bf16.mxu0 %vm991_vm0, %v990_v0  ;;  %705 = vmatprep.mubr.msk.bf16.mxu1 %vm991_vm0, %v990_v0  ;;  %v290_v9 = vmul.f32 0.17677669, %v288_v3  ;;  %v291_v10 = vmul.f32 0.17677669, %v289_v6  ;;  %v412_v23 = vld [vmem:[%s250_s18] sm:$0xff]  ;;  %v413_v24 = vld [vmem:[%s250_s18 + $0x8] sm:$0xff] }
  0x7b   : > { %v303_v7 = vsel %vm298_vm1, %v296_v4, 0  ;;  %v349_v8 = vsel %vm298_vm1, %v297_v5, 0  ;;  %v414_v25 = vpack.c.bf16 %v412_v23, %v412_v23  ;;  %v415_v26 = vpack.c.bf16 %v413_v24, %v413_v24  ;;  %s530_s16 = sshll.u32 %s282_s24, 4  ;;  %s688_s20 = sshll.u32 %s975_s15, 8  ;;  %s1260_s16 = int_to_ptr.vmem [resolvable:$true] %s530_s16 }
  0x7c   : > { %698 = vmatpush3.bf16.xpose.msra.mxu0 %v303_v7  ;;  %704 = vmatpush3.bf16.xpose.msra.mxu1 %v349_v8  ;;  %v292_v11 = vpack.c.bf16 %v290_v9, %v290_v9  ;;  %v293_v12 = vpack.c.bf16 %v291_v10, %v291_v10  ;;  %s1265_s30 = scalar_lea.hbm %s1318_s3, %s688_s20  ;;  %s516_s15 = scalar_lea.sflag [#allocation4], %s1225_s21 }
  0x7d   : > { %709 = vmatprep.subr.bf16.mxu0 %v990_v0  ;;  %715 = vmatprep.subr.bf16.mxu1 %v990_v0  ;;  %v421_v27 = vsel %vm419_vm3, %v414_v25, 0  ;;  %v467_v28 = vsel %vm419_vm3, %v415_v26, 0  ;;  %s897_s6 = scalar_lea.vmem %s1260_s16, 256  ;;  %p1347_p10 = scmp.ne.s32.totalorder %s1333_s25, 0 }
  0x7e   : > { %p898_p0 = scmp.ne.s32.totalorder %s1260_s16, %s897_s6  ;;  %s992_s8 = smov [#allocation8]  }
  0x7f   : > { %s901_s26 = sshll.u32 %s992_s8, 4  ;;  %s902_s26 = int_to_ptr.vmem [resolvable:$false] %s901_s26 }
  0x80   : > { %p899_p8 = pnand %p898_p0, %p1347_p10  ;;  %s903_s1 = scalar_lea.vmem %s902_s26, 512 }
  0x81   : > { %p904_p12 = scmp.lt.s32.totalorder %s1260_s16, %s902_s26  ;;  %p905_p1 = scmp.lt.s32.totalorder %s903_s1, %s897_s6 }
  0x82   : > { %p900_p9 = pneg %p899_p8 }
  0x83   : > { %700 = vmatmul.mubr.msk.bf16.vlgmr.msra.gmra.mrb[0].mxu0 %vm298_vm1, %v292_v11  ;;  %706 = vmatmul.mubr.msk.bf16.vlgmr.msra.gmra.mrb[0].mxu1 %vm298_vm1, %v293_v12  ;;  %p906_p6 = por %p905_p1, %p904_p12 }
  0x84   : > { %711 = vmatprep.mubr.msk.bf16.mxu0 %vm991_vm0, %v990_v0  ;;  %717 = vmatprep.mubr.msk.bf16.mxu1 %vm991_vm0, %v990_v0 }
  0x85   : > { %710 = vmatpush3.bf16.msra.mxu0 %v421_v27  ;;  %716 = vmatpush3.bf16.msra.mxu1 %v467_v28  ;;  %p907_p13 = pnand %p906_p6, %p900_p9 }
 0x156   : > { %v339_v13 = vpop.f32.mrb[0].mxu0  ;;  %v385_v14 = vpop.f32.mrb[0].mxu1 }
 0x157   : > { %v701_v15 = vpop.f32.mrb[1].mxu0  ;;  %v707_v16 = vpop.f32.mrb[1].mxu1  ;;  %v392_v17 = vsel %vm391_vm2, %v339_v13, -inf  ;;  %v395_v22 = vsel %vm391_vm2, %v385_v14, -inf }
 0x158   : > { %393 = vmax.xlane.f32.xlu0 %v392_v17  ;;  %v342_v18 = vpop.f32.mrb[2].mxu0  ;;  %v388_v19 = vpop.f32.mrb[2].mxu1 }
 0x159   : > { %v702_v20 = vpop.f32.mrb[3].mxu0  ;;  %v708_v21 = vpop.f32.mrb[3].mxu1 }
 0x15c   : > { %396 = vmax.xlane.f32.xlu0 %v395_v22 }
 0x1e5   : > { %v394_v29 = vpop.xlane.xlu0 %393 }
 0x1e6   : > { %v398_v30 = vsub.f32 %v339_v13, %v394_v29 }
 0x1e8   : > { %v400_v31 = vmul.f32 1.442695, %v398_v30 }
 0x1e9   : > { %v397_v32 = vpop.xlane.xlu0 %396 }
 0x1ea   : > { %799 = vpow2.f32 %v400_v31  ;;  %v399_v33 = vsub.f32 %v385_v14, %v397_v32 }
 0x1ec   : > { %v402_v34 = vmul.f32 1.442695, %v399_v33 }
 0x1ee   : > { %801 = vpow2.f32 %v402_v34 }
 0x1f4   : > { %v800_v35 = vpop.eup %799 }
 0x1f5   : > { %v404_v36 = vsel %vm391_vm2, %v800_v35, 0.0  ;;  %v410_v37 = vpack.c.bf16 %v800_v35, %v800_v35 }
 0x1f6   : > { %405 = vadd.xlane.f32.xlu1 %v404_v36 }
 0x1f7   : > { %712 = vmatmul.mubr.msk.bf16.vlgmr.msra.gmra.mrb[4].mxu0 %vm391_vm2, %v410_v37 }
 0x1f8   : > { %v802_v38 = vpop.eup %801 }
 0x1f9   : > { %v407_v39 = vsel %vm391_vm2, %v802_v38, 0.0  ;;  %v411_v40 = vpack.c.bf16 %v802_v38, %v802_v38 }
 0x1fa   : > { %408 = vadd.xlane.f32.xlu1 %v407_v39 }
 0x1fb   : > { %718 = vmatmul.mubr.msk.bf16.vlgmr.msra.gmra.mrb[4].mxu1 %vm391_vm2, %v411_v40 }
 0x283   : > { %v406_v41 = vpop.xlane.xlu1 %405 }
 0x284   : > { %803 = vrcp.f32 %v406_v41 }
 0x287   : > { %v409_v42 = vpop.xlane.xlu1 %408 }
 0x288   : > { %805 = vrcp.f32 %v409_v42 }
 0x28e   : > { %v804_v43 = vpop.eup %803 }
 0x292   : > { %v806_v49 = vpop.eup %805 }
 0x2ca   : > { %v457_v44 = vpop.f32.mrb[4].mxu0 }
 0x2cb   : > { %v510_v45 = vmul.f32 %v804_v43, %v457_v44  ;;  %v713_v46 = vpop.f32.mrb[5].mxu0 }
 0x2cc   : > { %v460_v47 = vpop.f32.mrb[6].mxu0 }
 0x2cd   : > { %513 = vst.msk [vmem:[%s282_s24] sm:$0xff] %vm298_vm1, %v510_v45  ;;  %v714_v48 = vpop.f32.mrb[7].mxu0 }
 0x2ce   : > { %v503_v50 = vpop.f32.mrb[4].mxu1 }
 0x2cf   : > { %v512_v51 = vmul.f32 %v806_v49, %v503_v50  ;;  %v719_v52 = vpop.f32.mrb[5].mxu1 }
 0x2d0   : > { %v506_v53 = vpop.f32.mrb[6].mxu1 }
 0x2d1   : > { %514 = vst.msk [vmem:[%s282_s24 + $0x8] sm:$0xff] %vm298_vm1, %v512_v51  ;;  %v720_v54 = vpop.f32.mrb[7].mxu1 }
 0x2d2   : > { %910 = shalt.err (!%p907_p13)
}
 0x2d3   : > { %s911_s28 = scalar_lea.hbm %s1265_s30, 256  ;;  %s915_s10 = scalar_lea.hbm %s1318_s3, 512 }
 0x2d4   : > { %p912_p11 = scmp.ne.s32.totalorder %s1265_s30, %s911_s28  ;;  %p916_p7 = scmp.lt.u32.totalorder %s1265_s30, %s1318_s3 }
 0x2d5   : > { %p917_p4 = scmp.lt.u32.totalorder %s915_s10, %s911_s28  ;;  %p919_p0 = scmp.lt.u32.totalorder %s911_s28, %s1265_s30 }
 0x2d6   : > { %p913_p2 = pnand %p912_p11, %p1347_p10 }
 0x2d7   : > { %p918_p3 = por %p917_p4, %p916_p7 }
 0x2d8   : > { %p914_p5 = pneg %p913_p2 }
 0x2d9   : > { %p920_p8 = por %p919_p0, %p918_p3 }
 0x2db   : > { %p921_p9 = pnand %p920_p8, %p914_p5 }
 0x2dd   : > { %924 = shalt.err (!%p921_p9)
}
 0x2de   : > { %s993_s11 = smov 128   ;;  %s994_s19 = smov 8  }
 0x2df   : > { %727 = dma.vmem_to_hbm [thread:$0]  (%p1347_p10), %s1260_s16, 256, %s1265_s30, %s516_s15, %s993_s11, %s993_s11, %s994_s19  }
 0x2e0 PF: > { %s545_s9 = sand.u32 1, %s963_s12   ;;  %p1348_p12 = scmp.ne.s32.totalorder %s1335_s27, 0 }
 0x2e1   : > { %p1349_p1 = scmp.ge.s32.totalorder %s983_s17, 2  ;;  %s546_s18 = scalar_lea.sflag [#allocation4], %s545_s9 }
 0x2e3   : > { %p740_p6 = pnand %p1349_p1, %p1348_p12 }
 0x2e5   : > { %958 = dma.done.wait (!%p740_p6), %s546_s18, 256  }
 0x2e6   : > { %960 = vsyncadd (!%p740_p6), %s546_s18, 4294967040  ;;  %s22_s17 = sadd.s32 1, %s983_s17   ;;  %s1350_s24 = sld [smem:[#allocation14_spill]] }
 0x2e7   : > { %p19_p13 = scmp.ge.s32.totalorder %s22_s17, 4   ;;  %s1351_s15 = sld [smem:[#allocation12_spill]] }
 0x2e8   : > { %s1352_s16 = sld [smem:[#allocation13_spill]]  ;;  %s1353_s12 = smov %s967_s13 }
 0x2e9   : > { %s1354_s13 = smov %s971_s14  ;;  %21 = sbr.rel (!%p19_p13) target bundleno = 10 (0xa), region = 101 }
 0x2ec   : > { %s1355_s14 = smov %s1350_s24 }
 0x2f0   :  { %551 = vsyncpa [#allocation3], 1 }
 0x2f1   :  { %553 = vsyncpa [#allocation3 + $0x1], 1 }
 0x2f2   :  { %554 = vsyncpa [#allocation6], 1 }
 0x2f3   :  { %556 = vsyncpa [#allocation6 + $0x1], 1 }
 0x2f4   :  { %557 = vsyncpa [#allocation4], 1 }
 0x2f5   :  { %559 = vsyncpa [#allocation4 + $0x1], 1 }

</bundles_post_ra>
